<compile_context>
chip_gen: v7x
topology: tpu7x:2x2x1
jax: 0.10.0
libtpu: 0.0.40
codegen_flags: <defaults>
</compile_context>

<pallas_src>
import jax
import jax.numpy as jnp
from jax.experimental import pallas as pl
from jax.experimental.pallas import tpu as pltpu

EPS = 1e-5
_MIN_GRID_STEPS = 4  # >= 2 steps per TensorCore on 2-TC (v7x) chips.


# --------------------------------------------------------------------------- #
# Kernels
# --------------------------------------------------------------------------- #
def _revin_norm_fused_kernel(x_ref, w_ref, b_ref, out_ref, stats_ref):
    # x_ref: (Bt, T, C); w_ref/b_ref: (1, C); out_ref: (Bt, T, C);
    # stats_ref: (Bt, 2, C) [row 0 = mean, row 1 = stdev]
    x = x_ref[...].astype(jnp.float32)
    mean = jnp.mean(x, axis=1, keepdims=True)                     # (Bt, 1, C)
    # Centered value only transient inside the reduction (no block-sized temp
    # kept live until the output store).
    var = jnp.mean((x - mean) * (x - mean), axis=1, keepdims=True)
    std = jnp.sqrt(var + EPS)                                     # exact stored state
    # Per-channel scale via rsqrt (EUP slot); hot loop is one FMA per element.
    scale = jax.lax.rsqrt(var + EPS) * w_ref[...][None]           # (Bt, 1, C)
    shift = b_ref[...][None] - mean * scale                       # (Bt, 1, C)
    out_ref[...] = (x * scale + shift).astype(out_ref.dtype)
    stats_ref[...] = jnp.concatenate([mean, std], axis=1)         # single store


def _make_tiled_stats_kernel(t_total):
    inv_t = 1.0 / float(t_total)

    def kernel(x_ref, stats_ref):
        # x_ref: (Bt, Tt, C); stats_ref: (Bt, 2, C) resident across the T axis.
        t = pl.program_id(1)

        @pl.when(t == 0)
        def _():
            stats_ref[...] = jnp.zeros_like(stats_ref)

        x = x_ref[...].astype(jnp.float32)
        s = jnp.sum(x, axis=1, keepdims=True)                     # (Bt, 1, C)
        ss = jnp.sum(x * x, axis=1, keepdims=True)                # (Bt, 1, C)
        stats_ref[...] += jnp.concatenate([s, ss], axis=1)

        @pl.when(t == pl.num_programs(1) - 1)
        def _():
            mean = stats_ref[:, 0:1, :] * inv_t
            var = jnp.maximum(stats_ref[:, 1:2, :] * inv_t - mean * mean, 0.0)
            std = jnp.sqrt(var + EPS)
            stats_ref[...] = jnp.concatenate([mean, std], axis=1)

    return kernel


def _revin_apply_norm_kernel(x_ref, stats_ref, w_ref, b_ref, out_ref):
    # Elementwise pass of the T-tiled path: y = x * scale + shift.
    x = x_ref[...].astype(jnp.float32)
    mean = stats_ref[:, 0:1, :]
    std = stats_ref[:, 1:2, :]
    scale = w_ref[...][None] / std                                # tiny (Bt,1,C) divide
    shift = b_ref[...][None] - mean * scale
    out_ref[...] = (x * scale + shift).astype(out_ref.dtype)


def _revin_denorm_kernel(x_ref, stats_ref, w_ref, b_ref, out_ref):
    # ((x - b) / (w + eps^2)) * std + mean  ==  x * scale + shift
    x = x_ref[...].astype(jnp.float32)
    mean = stats_ref[:, 0:1, :]
    std = stats_ref[:, 1:2, :]
    inv_w = 1.0 / (w_ref[...] + EPS * EPS)                        # (1, C), tiny divide
    scale = std * inv_w[None]                                     # (Bt, 1, C)
    shift = mean - b_ref[...][None] * scale
    out_ref[...] = (x * scale + shift).astype(out_ref.dtype)


# --------------------------------------------------------------------------- #
# Sizing heuristics
# --------------------------------------------------------------------------- #
def _hw_budgets():
    """(per-block input-byte budget, vmem_limit_bytes), generation-aware."""
    vmem = None
    try:
        info = pltpu.get_tpu_info()
        vmem = getattr(info, "vmem_capacity_bytes", None)
    except Exception:
        vmem = None
    if vmem is not None and vmem >= 128 * 1024 * 1024:
        # v5e / v6e (128 MiB physical VMEM): bigger blocks, higher scoped limit.
        return 8 * 1024 * 1024, 64 * 1024 * 1024
    # v7x (64 MiB physical VMEM) or unknown: conservative, safe everywhere.
    return 4 * 1024 * 1024, 48 * 1024 * 1024


def _choose_blocks(B, T, C, itemsize, budget_bytes):
    """Return (bt, tt, fused).

    Budget counts per-step *input-dtype* bytes (so bf16 gets 2x larger blocks);
    total VMEM (double-buffered in/out + f32 temps) stays well under the
    scoped vmem_limit for either budget/limit pair from _hw_budgets.
    """
    budget_elems = max(1, budget_bytes // max(1, itemsize))
    slab_elems = T * C                                   # one full-T batch
    max_bt = budget_elems // slab_elems
    if max_bt >= 1:
        divs = [d for d in range(1, B + 1) if B % d == 0 and d <= max_bt]
        pref = [d for d in divs if B // d >= _MIN_GRID_STEPS]
        bt = max(pref) if pref else max(divs)
        return bt, T, True
    # Single-batch slab exceeds the budget: T-tiled two-pass path.
    # tt must divide T and be a multiple of 8 (sublane tiling rule).
    tdivs = [d for d in range(8, T, 8) if T % d == 0 and d * C <= budget_elems]
    if not tdivs:
        # TODO(synk): no clean sublane-aligned T tiling; fall back to one
        # whole-T batch per step (relies on the raised vmem_limit).
        return 1, T, True
    pref = [d for d in tdivs if (T // d) >= _MIN_GRID_STEPS]
    tt = max(pref) if pref else max(tdivs)
    return 1, tt, False


# --------------------------------------------------------------------------- #
# Wrappers
# --------------------------------------------------------------------------- #
def revin_norm(x, weight, bias, *, block_budget_bytes=None):
    """mode == 'norm'. x: (B, T, C); weight/bias: (C,).

    Returns (x_norm, stats) with stats of shape (B, 2, C):
      stats[:, 0:1, :] = mean, stats[:, 1:2, :] = stdev = sqrt(var + eps).
    """
    B, T, C = x.shape
    budget, vmem_limit = _hw_budgets()
    if block_budget_bytes is not None:
        budget = block_budget_bytes
    bt, tt, fused = _choose_blocks(B, T, C, x.dtype.itemsize, budget)

    w2 = jnp.asarray(weight, jnp.float32).reshape(1, C)
    b2 = jnp.asarray(bias, jnp.float32).reshape(1, C)
    out_shape = jax.ShapeDtypeStruct((B, T, C), x.dtype)
    stats_shape = jax.ShapeDtypeStruct((B, 2, C), jnp.float32)

    if fused:
        x_norm, stats = pl.pallas_call(
            _revin_norm_fused_kernel,
            out_shape=(out_shape, stats_shape),
            grid_spec=pltpu.PrefetchScalarGridSpec(
                num_scalar_prefetch=0,
                grid=(B // bt,),
                in_specs=[
                    pl.BlockSpec((bt, T, C), lambda i: (i, 0, 0)),
                    pl.BlockSpec((1, C), lambda i: (0, 0)),
                    pl.BlockSpec((1, C), lambda i: (0, 0)),
                ],
                out_specs=[
                    pl.BlockSpec((bt, T, C), lambda i: (i, 0, 0)),
                    pl.BlockSpec((bt, 2, C), lambda i: (i, 0, 0)),
                ],
            ),
            compiler_params=pltpu.CompilerParams(
                dimension_semantics=("parallel",),
                vmem_limit_bytes=vmem_limit,
            ),
        )(x, w2, b2)
        return x_norm, stats

    # --- T-tiled two-pass path (per-batch slab larger than the block budget) ---
    stats = pl.pallas_call(
        _make_tiled_stats_kernel(T),
        out_shape=stats_shape,
        grid_spec=pltpu.PrefetchScalarGridSpec(
            num_scalar_prefetch=0,
            grid=(B // bt, T // tt),
            in_specs=[pl.BlockSpec((bt, tt, C), lambda i, t: (i, t, 0))],
            out_specs=pl.BlockSpec((bt, 2, C), lambda i, t: (i, 0, 0)),
        ),
        compiler_params=pltpu.CompilerParams(
            dimension_semantics=("parallel", "arbitrary"),
            vmem_limit_bytes=vmem_limit,
        ),
    )(x)

    x_norm = pl.pallas_call(
        _revin_apply_norm_kernel,
        out_shape=out_shape,
        grid_spec=pltpu.PrefetchScalarGridSpec(
            num_scalar_prefetch=0,
            grid=(B // bt, T // tt),
            in_specs=[
                pl.BlockSpec((bt, tt, C), lambda i, t: (i, t, 0)),
                pl.BlockSpec((bt, 2, C), lambda i, t: (i, 0, 0)),
                pl.BlockSpec((1, C), lambda i, t: (0, 0)),
                pl.BlockSpec((1, C), lambda i, t: (0, 0)),
            ],
            out_specs=pl.BlockSpec((bt, tt, C), lambda i, t: (i, t, 0)),
        ),
        compiler_params=pltpu.CompilerParams(
            dimension_semantics=("parallel", "parallel"),
            vmem_limit_bytes=vmem_limit,
        ),
    )(x, stats, w2, b2)
    return x_norm, stats


def revin_denorm(x, stats, weight, bias, *, block_budget_bytes=None):
    """mode == 'denorm'. x: (B, T, C); stats: (B, 2, C) from revin_norm."""
    B, T, C = x.shape
    budget, vmem_limit = _hw_budgets()
    if block_budget_bytes is not None:
        budget = block_budget_bytes
    bt, tt, _ = _choose_blocks(B, T, C, x.dtype.itemsize, budget)

    w2 = jnp.asarray(weight, jnp.float32).reshape(1, C)
    b2 = jnp.asarray(bias, jnp.float32).reshape(1, C)
    stats = jnp.asarray(stats, jnp.float32)

    return pl.pallas_call(
        _revin_denorm_kernel,
        out_shape=jax.ShapeDtypeStruct((B, T, C), x.dtype),
        grid_spec=pltpu.PrefetchScalarGridSpec(
            num_scalar_prefetch=0,
            grid=(B // bt, T // tt),
            in_specs=[
                pl.BlockSpec((bt, tt, C), lambda i, t: (i, t, 0)),
                pl.BlockSpec((bt, 2, C), lambda i, t: (i, 0, 0)),
                pl.BlockSpec((1, C), lambda i, t: (0, 0)),
                pl.BlockSpec((1, C), lambda i, t: (0, 0)),
            ],
            out_specs=pl.BlockSpec((bt, tt, C), lambda i, t: (i, t, 0)),
        ),
        compiler_params=pltpu.CompilerParams(
            dimension_semantics=("parallel", "parallel"),
            vmem_limit_bytes=vmem_limit,
        ),
    )(x, stats, w2, b2)


# --------------------------------------------------------------------------- #
# Self-test
# --------------------------------------------------------------------------- #
if __name__ == "__main__":
    def ref_norm(x, w, b):
        mean = jnp.mean(x, axis=1, keepdims=True)
        std = jnp.sqrt(jnp.var(x, axis=1, keepdims=True) + EPS)  # unbiased=False
        return (x - mean) / std * w + b, mean, std

    key = jax.random.PRNGKey(0)
    kx, kw, kb, kx2 = jax.random.split(key, 4)

    # num_features = C = 8; small shapes consistent with the module.
    B, T, C = 2, 16, 8
    x = jax.random.normal(kx, (B, T, C), dtype=jnp.float32) * 3.0 + 1.5

    # Default parameter init (nn.Parameter(ones / zeros)).
    w = jnp.ones((C,), jnp.float32)
    b = jnp.zeros((C,), jnp.float32)

    # ---- mode == 'norm' (fused single-pass path) ----
    x_norm, stats = revin_norm(x, w, b)
    jax.block_until_ready((x_norm, stats))
    y_ref, m_ref, s_ref = ref_norm(x, w, b)
    assert jnp.allclose(x_norm, y_ref, atol=1e-5, rtol=1e-5)
    assert jnp.allclose(stats[:, 0:1, :], m_ref, atol=1e-5, rtol=1e-5)
    assert jnp.allclose(stats[:, 1:2, :], s_ref, atol=1e-5, rtol=1e-5)

    # ---- mode == 'denorm' (round trip) ----
    x_back = revin_denorm(x_norm, stats, w, b)
    jax.block_until_ready(x_back)
    assert jnp.allclose(x_back, x, atol=1e-3, rtol=1e-3)

    # ---- non-trivial affine params (exercises the folded FMA forms) ----
    w_nt = 1.0 + 0.25 * jax.random.normal(kw, (C,), jnp.float32)
    b_nt = 0.5 * jax.random.normal(kb, (C,), jnp.float32)
    y_nt, stats_nt = revin_norm(x, w_nt, b_nt)
    y_nt_ref, _, _ = ref_norm(x, w_nt, b_nt)
    assert jnp.allclose(y_nt, y_nt_ref, atol=1e-5, rtol=1e-5)
    x_nt_back = revin_denorm(y_nt, stats_nt, w_nt, b_nt)
    jax.block_until_ready(x_nt_back)
    assert jnp.allclose(x_nt_back, x, atol=1e-3, rtol=1e-3)

    # ---- T-tiled two-pass path (forced via a tiny block budget) ----
    B2, T2, C2 = 2, 64, 8
    x_big = jax.random.normal(kx2, (B2, T2, C2), dtype=jnp.float32) * 2.0 - 0.7
    w_big = jnp.ones((C2,), jnp.float32)
    b_big = jnp.zeros((C2,), jnp.float32)
    y_big, stats_big = revin_norm(x_big, w_big, b_big, block_budget_bytes=1024)
    jax.block_until_ready((y_big, stats_big))
    yb_ref, mb_ref, sb_ref = ref_norm(x_big, w_big, b_big)
    assert jnp.allclose(y_big, yb_ref, atol=1e-4, rtol=1e-4)
    assert jnp.allclose(stats_big[:, 0:1, :], mb_ref, atol=1e-5, rtol=1e-5)
    assert jnp.allclose(stats_big[:, 1:2, :], sb_ref, atol=1e-4, rtol=1e-4)
    x_big_back = revin_denorm(y_big, stats_big, w_big, b_big, block_budget_bytes=1024)
    jax.block_until_ready(x_big_back)
    assert jnp.allclose(x_big_back, x_big, atol=1e-3, rtol=1e-3)

    print("KERNEL_OK")
</pallas_src>

<mosaic_0001>
module attributes {stable_mosaic.version = 11 : i64} {
  func.func @_revin_norm_fused_kernel(%arg0: i32, %arg1: memref<2x16x8xf32, #tpu.memory_space<vmem>>, %arg2: memref<1x8xf32, #tpu.memory_space<vmem>>, %arg3: memref<1x8xf32, #tpu.memory_space<vmem>>, %arg4: memref<2x16x8xf32, #tpu.memory_space<vmem>>, %arg5: memref<2x2x8xf32, #tpu.memory_space<vmem>>) attributes {dimension_semantics = [#tpu.dimension_semantics<parallel>], iteration_bounds = array<i64: 1>, scalar_prefetch = 0 : i64, scratch_operands = 0 : i64, tpu.core_type = #tpu.core_type<tc>, window_params = [{transform_indices = @transform_0, window_bounds = array<i64: 2, 16, 8>}, {pipeline_mode = #tpu.pipeline_mode<synchronous>, transform_indices = @transform_1, window_bounds = array<i64: 1, 8>}, {pipeline_mode = #tpu.pipeline_mode<synchronous>, transform_indices = @transform_2, window_bounds = array<i64: 1, 8>}, {transform_indices = @transform_3, window_bounds = array<i64: 2, 16, 8>}, {transform_indices = @transform_4, window_bounds = array<i64: 2, 2, 8>}]} {
    %c0 = arith.constant 0 : index
    %c0_0 = arith.constant 0 : index
    %c0_1 = arith.constant 0 : index
    %0 = vector.load %arg1[%c0, %c0_0, %c0_1] : memref<2x16x8xf32, #tpu.memory_space<vmem>>, vector<2x16x8xf32>
    %cst = arith.constant dense<0.000000e+00> : vector<2x8xf32>
    %1 = vector.multi_reduction <add>, %0, %cst [1] : vector<2x16x8xf32> to vector<2x8xf32>
    %2 = vector.shape_cast %1 : vector<2x8xf32> to vector<2x1x8xf32>
    %cst_2 = arith.constant 1.600000e+01 : f32
    %3 = vector.broadcast %cst_2 : f32 to vector<2x1x8xf32>
    %4 = arith.divf %2, %3 : vector<2x1x8xf32>
    %5 = vector.broadcast %4 : vector<2x1x8xf32> to vector<2x16x8xf32>
    %6 = arith.subf %0, %5 : vector<2x16x8xf32>
    %7 = vector.broadcast %4 : vector<2x1x8xf32> to vector<2x16x8xf32>
    %8 = arith.subf %0, %7 : vector<2x16x8xf32>
    %9 = arith.mulf %6, %8 : vector<2x16x8xf32>
    %cst_3 = arith.constant dense<0.000000e+00> : vector<2x8xf32>
    %10 = vector.multi_reduction <add>, %9, %cst_3 [1] : vector<2x16x8xf32> to vector<2x8xf32>
    %11 = vector.shape_cast %10 : vector<2x8xf32> to vector<2x1x8xf32>
    %cst_4 = arith.constant 1.600000e+01 : f32
    %12 = vector.broadcast %cst_4 : f32 to vector<2x1x8xf32>
    %13 = arith.divf %11, %12 : vector<2x1x8xf32>
    %cst_5 = arith.constant 9.99999974E-6 : f32
    %14 = vector.broadcast %cst_5 : f32 to vector<2x1x8xf32>
    %15 = arith.addf %13, %14 : vector<2x1x8xf32>
    %16 = math.sqrt %15 : vector<2x1x8xf32>
    %cst_6 = arith.constant 9.99999974E-6 : f32
    %17 = vector.broadcast %cst_6 : f32 to vector<2x1x8xf32>
    %18 = arith.addf %13, %17 : vector<2x1x8xf32>
    %19 = math.rsqrt %18 : vector<2x1x8xf32>
    %c0_7 = arith.constant 0 : index
    %c0_8 = arith.constant 0 : index
    %20 = vector.load %arg2[%c0_7, %c0_8] : memref<1x8xf32, #tpu.memory_space<vmem>>, vector<1x8xf32>
    %21 = vector.shape_cast %20 : vector<1x8xf32> to vector<1x1x8xf32>
    %22 = vector.broadcast %21 : vector<1x1x8xf32> to vector<2x1x8xf32>
    %23 = arith.mulf %19, %22 : vector<2x1x8xf32>
    %c0_9 = arith.constant 0 : index
    %c0_10 = arith.constant 0 : index
    %24 = vector.load %arg3[%c0_9, %c0_10] : memref<1x8xf32, #tpu.memory_space<vmem>>, vector<1x8xf32>
    %25 = vector.shape_cast %24 : vector<1x8xf32> to vector<1x1x8xf32>
    %26 = arith.mulf %4, %23 : vector<2x1x8xf32>
    %27 = vector.broadcast %25 : vector<1x1x8xf32> to vector<2x1x8xf32>
    %28 = arith.subf %27, %26 : vector<2x1x8xf32>
    %29 = vector.broadcast %23 : vector<2x1x8xf32> to vector<2x16x8xf32>
    %30 = arith.mulf %0, %29 : vector<2x16x8xf32>
    %31 = vector.broadcast %28 : vector<2x1x8xf32> to vector<2x16x8xf32>
    %32 = arith.addf %30, %31 : vector<2x16x8xf32>
    %c0_11 = arith.constant 0 : index
    %c0_12 = arith.constant 0 : index
    %c0_13 = arith.constant 0 : index
    %33 = vector.load %arg4[%c0_11, %c0_12, %c0_13] : memref<2x16x8xf32, #tpu.memory_space<vmem>>, vector<2x16x8xf32>
    tpu.vector_store %arg4[%c0_11, %c0_12, %c0_13], %32 {strides = array<i32>} : memref<2x16x8xf32, #tpu.memory_space<vmem>>, vector<2x16x8xf32>,
    %34 = tpu.concatenate %4, %16 in 1 : vector<2x1x8xf32>, vector<2x1x8xf32> -> vector<2x2x8xf32>
    %c0_14 = arith.constant 0 : index
    %c0_15 = arith.constant 0 : index
    %c0_16 = arith.constant 0 : index
    %35 = vector.load %arg5[%c0_14, %c0_15, %c0_16] : memref<2x2x8xf32, #tpu.memory_space<vmem>>, vector<2x2x8xf32>
    tpu.vector_store %arg5[%c0_14, %c0_15, %c0_16], %34 {strides = array<i32>} : memref<2x2x8xf32, #tpu.memory_space<vmem>>, vector<2x2x8xf32>,
    return
  }
  func.func @transform_0(%arg0: i32) -> (i32, i32, i32) {
    %c0_i32 = arith.constant 0 : i32
    %c0_i32_0 = arith.constant 0 : i32
    %c0_i32_1 = arith.constant 0 : i32
    return %arg0, %c0_i32, %c0_i32_0 : i32, i32, i32
  }
  func.func @transform_1(%arg0: i32) -> (i32, i32) {
    %c0_i32 = arith.constant 0 : i32
    %c0_i32_0 = arith.constant 0 : i32
    %c0_i32_1 = arith.constant 0 : i32
    return %c0_i32, %c0_i32_0 : i32, i32
  }
  func.func @transform_2(%arg0: i32) -> (i32, i32) {
    %c0_i32 = arith.constant 0 : i32
    %c0_i32_0 = arith.constant 0 : i32
    %c0_i32_1 = arith.constant 0 : i32
    return %c0_i32, %c0_i32_0 : i32, i32
  }
  func.func @transform_3(%arg0: i32) -> (i32, i32, i32) {
    %c0_i32 = arith.constant 0 : i32
    %c0_i32_0 = arith.constant 0 : i32
    %c0_i32_1 = arith.constant 0 : i32
    return %arg0, %c0_i32, %c0_i32_0 : i32, i32, i32
  }
  func.func @transform_4(%arg0: i32) -> (i32, i32, i32) {
    %c0_i32 = arith.constant 0 : i32
    %c0_i32_0 = arith.constant 0 : i32
    %c0_i32_1 = arith.constant 0 : i32
    return %arg0, %c0_i32, %c0_i32_0 : i32, i32, i32
  }
}

</mosaic_0001>

<bundles_post_ra>
// kernel: tpu_custom_call.1
= control target key start
LH: loop header
LB: loop body
LE: loop exit
PB: predicated region body
PF: predicated region fallthrough
CT: control target
= control target key end

     0   :  { %vm21_vm0 = vcmask 64512   ;;  %s305_s0 = inlined_call_operand.vmem [shape: f32[2,16,8], index: 0, kind: input, shape index: {}]   ;;  %s306_s1 = inlined_call_operand.vmem [shape: f32[1,8], index: 1, kind: input, shape index: {}]   ;;  %s307_s2 = inlined_call_operand.vmem [shape: f32[1,8], index: 2, kind: input, shape index: {}]   ;;  %s308_s3 = inlined_call_operand.vmem [shape: f32[2,16,8], index: 3, kind: output, shape index: {0}]   ;;  %s309_s4 = inlined_call_operand.hbm [shape: f32[2,2,8], index: 4, kind: output, shape index: {1}]  }
   0x1   :  { %v217_v0 = vld [vmem:[%s305_s0] sm:$0xff]  ;;  %v222_v1 = vld [vmem:[%s305_s0 + $0x8] sm:$0xff]  ;;  %v227_v2 = vld [vmem:[%s305_s0 + $0x10] sm:$0xff] }
   0x2   :  { %v22_v3 = vsel %vm21_vm0, %v217_v0, 0.0  ;;  %v23_v4 = vsel %vm21_vm0, %v222_v1, 0.0  ;;  %v236_v5 = vld [vmem:[%s305_s0 + $0x18] sm:$0xff]  ;;  %v31_v6 = vsel %vm21_vm0, %v227_v2, 0.0 }
   0x3   :  { %v24_v7 = vadd.f32 %v23_v4, %v22_v3  ;;  %v32_v8 = vsel %vm21_vm0, %v236_v5, 0.0 }
   0x4   :  { %10 = vsyncpa [#allocation3], 0  ;;  %v33_v9 = vadd.f32 %v32_v8, %v31_v6  ;;  %v97_v54 = vlaneseq  ;;  %v89_v56 = vld [vmem:[%s306_s1] sm:$0x1]  ;;  %vm129_vm4 = vcmask 1040384   ;;  %s186_s26 = smov [#allocation2]  }
   0x5   :  { %v25_v10 = vrot.slane %v24_v7, 4  ;;  %v92_v4 = vld [vmem:[%s307_s2] sm:$0x1]  ;;  %s142_s1 = sshll.u32 %s186_s26, 4  ;;  %vm132_vm6 = vcmask 58368   ;;  %s143_s1 = int_to_ptr.vmem [resolvable:$true] %s142_s1 }
   0x6   :  { %v34_v11 = vrot.slane %v33_v9, 4  ;;  %v98_v55 = vshrl.u32 %v97_v54, 7  ;;  %s162_s2 = scalar_lea.vmem %s143_s1, 64  ;;  %p167_p1 = scmp.lt.s32.totalorder %s143_s1, %s143_s1 }
   0x7   :  { %v26_v12 = vadd.f32 %v25_v10, %v24_v7  ;;  %p163_p0 = scmp.ne.s32.totalorder %s143_s1, %s162_s2  ;;  %p168_p2 = scmp.lt.s32.totalorder %s162_s2, %s162_s2 }
   0x8   :  { %v35_v13 = vadd.f32 %v34_v11, %v33_v9  ;;  %v99_v57 = vsub.s32 0, %v98_v55 }
   0x9   :  { %v27_v14 = vrot.slane %v26_v12, 2  ;;  %p169_p3 = por %p168_p2, %p167_p1 }
   0xa   :  { %v36_v15 = vrot.slane %v35_v13, 2 }
   0xb   :  { %v28_v16 = vadd.f32 %v27_v14, %v26_v12  ;;  %p170_p4 = pnand %p169_p3, %p163_p0 }
   0xc   :  { %v37_v17 = vadd.f32 %v36_v15, %v35_v13 }
   0xd   :  { %v29_v18 = vrot.slane %v28_v16, 1 }
   0xe   :  { %v38_v19 = vrot.slane %v37_v17, 1 }
   0xf   :  { %v30_v20 = vadd.f32 %v29_v18, %v28_v16 }
  0x10   :  { %v39_v21 = vadd.f32 %v38_v19, %v37_v17 }
  0x11   :  { %v242_v22 = vmul.f32 0.0625, %v30_v20 }
  0x12   :  { %v244_v23 = vmul.f32 0.0625, %v39_v21 }
  0x13   :  { %v43_v24 = vsub.f32 %v217_v0, %v242_v22  ;;  %v44_v25 = vsub.f32 %v222_v1, %v242_v22 }
  0x14   :  { %v45_v26 = vsub.f32 %v227_v2, %v244_v23  ;;  %v46_v27 = vsub.f32 %v236_v5, %v244_v23 }
  0x15   :  { %v47_v28 = vmul.f32 %v43_v24, %v43_v24  ;;  %v48_v29 = vmul.f32 %v44_v25, %v44_v25 }
  0x16   :  { %v49_v30 = vmul.f32 %v45_v26, %v45_v26  ;;  %v50_v31 = vmul.f32 %v46_v27, %v46_v27 }
  0x17   :  { %v51_v32 = vsel %vm21_vm0, %v47_v28, 0.0  ;;  %v52_v33 = vsel %vm21_vm0, %v48_v29, 0.0 }
  0x18   :  { %v53_v34 = vadd.f32 %v52_v33, %v51_v32  ;;  %v60_v35 = vsel %vm21_vm0, %v49_v30, 0.0  ;;  %v61_v36 = vsel %vm21_vm0, %v50_v31, 0.0 }
  0x19   :  { %v62_v37 = vadd.f32 %v61_v36, %v60_v35 }
  0x1a   :  { %v54_v38 = vrot.slane %v53_v34, 4 }
  0x1b   :  { %v63_v39 = vrot.slane %v62_v37, 4 }
  0x1c   :  { %v55_v40 = vadd.f32 %v54_v38, %v53_v34 }
  0x1d   :  { %v64_v41 = vadd.f32 %v63_v39, %v62_v37 }
  0x1e   :  { %v56_v42 = vrot.slane %v55_v40, 2 }
  0x1f   :  { %v65_v43 = vrot.slane %v64_v41, 2 }
  0x20   :  { %v57_v44 = vadd.f32 %v56_v42, %v55_v40 }
  0x21   :  { %v66_v45 = vadd.f32 %v65_v43, %v64_v41 }
  0x22   :  { %v58_v46 = vrot.slane %v57_v44, 1 }
  0x23   :  { %v67_v47 = vrot.slane %v66_v45, 1 }
  0x24   :  { %v59_v48 = vadd.f32 %v58_v46, %v57_v44 }
  0x25   :  { %v68_v49 = vadd.f32 %v67_v47, %v66_v45 }
  0x26   :  { %v69_v50 = vmul.f32 0.0625, %v59_v48 }
  0x27   :  { %v70_v51 = vmul.f32 0.0625, %v68_v49 }
  0x28   :  { %v71_v52 = vadd.f32 1e-05, %v69_v50 }
  0x29   :  { %v72_v53 = vadd.f32 1e-05, %v70_v51 }
  0x2a   :  { %158 = vrsqrt.f32 %v71_v52  ;;  %vm75_vm1 = vcmp.eq.f32.partialorder %v71_v52, inf  ;;  %vm77_vm2 = vcmp.eq.f32.partialorder %v71_v52, 0.0  ;;  %v78_v59 = vand.u32 2147483648, %v71_v52 }
  0x2b   :  { %160 = vrsqrt.f32 %v72_v53  ;;  %vm82_vm3 = vcmp.eq.f32.partialorder %v72_v53, inf  ;;  %v85_v62 = vand.u32 2147483648, %v72_v53  ;;  %vm84_vm5 = vcmp.eq.f32.partialorder %v72_v53, 0.0 }
  0x34   :  { %v159_v58 = vpop.eup %158 }
  0x35   :  { %v161_v60 = vpop.eup %160  ;;  %v74_v61 = vmul.f32 %v159_v58, %v71_v52  ;;  %v90_v63 = vmul.f32 %v159_v58, %v89_v56 }
  0x36   :  { %v81_v3 = vmul.f32 %v161_v60, %v72_v53  ;;  %v91_v6 = vmul.f32 %v161_v60, %v89_v56 }
  0x37   :  { %v76_v7 = vsel %vm75_vm1, %v71_v52, %v74_v61  ;;  %v93_v8 = vmul.f32 %v90_v63, %v242_v22  ;;  %v100_v9 = vrot.slane %v90_v63, %v99_v57 }
  0x38   :  { %v79_v10 = vsel %vm77_vm2, %v78_v59, %v76_v7  ;;  %v83_v11 = vsel %vm82_vm3, %v72_v53, %v81_v3  ;;  %v94_v12 = vmul.f32 %v91_v6, %v244_v23  ;;  %v104_v13 = vrot.slane %v91_v6, %v99_v57 }
  0x39   :  { %v130_v14 = vsel %vm129_vm4, %v242_v22, %v79_v10  ;;  %v86_v15 = vsel %vm84_vm5, %v85_v62, %v83_v11  ;;  %v95_v16 = vsub.f32 %v92_v4, %v93_v8  ;;  %v105_v17 = vmul.f32 %v100_v9, %v217_v0 }
  0x3a   :  { %133 = vst.msk [vmem:[#allocation2] sm:$0x3] %vm132_vm6, %v130_v14  ;;  %v131_v18 = vsel %vm129_vm4, %v244_v23, %v86_v15  ;;  %v106_v19 = vmul.f32 %v100_v9, %v222_v1  ;;  %v96_v20 = vsub.f32 %v92_v4, %v94_v12  ;;  %v107_v21 = vmul.f32 %v104_v13, %v227_v2 }
  0x3b   :  { %134 = vst.msk [vmem:[#allocation2 + $0x2] sm:$0x3] %vm132_vm6, %v131_v18  ;;  %v114_v24 = vrot.slane %v95_v16, %v99_v57  ;;  %v108_v22 = vmul.f32 %v104_v13, %v236_v5 }
  0x3c   :  { %v118_v25 = vrot.slane %v96_v20, %v99_v57 }
  0x3d   :  { %173 = shalt.err (!%p170_p4)
}
  0x3e   :  { %s174_s29 = scalar_lea.hbm %s309_s4, 64 }
  0x3f   :  { %p175_p5 = scmp.ne.s32.totalorder %s309_s4, %s174_s29  ;;  %p178_p6 = scmp.lt.u32.totalorder %s174_s29, %s309_s4 }
  0x41   :  { %p180_p7 = pnand %p178_p6, %p175_p5 }
  0x43   :  { %183 = shalt.err (!%p180_p7)
}
  0x44   :  { %s187_s8 = smov 32   ;;  %s188_s9 = smov 2   ;;  %v121_v0 = vadd.f32 %v114_v24, %v105_v17  ;;  %v122_v1 = vadd.f32 %v114_v24, %v106_v19  ;;  %v123_v2 = vadd.f32 %v118_v25, %v107_v21  ;;  %v124_v5 = vadd.f32 %v118_v25, %v108_v22 }
  0x45   :  { %148 = dma.vmem_to_hbm [thread:$0]  %s143_s1, 64, %s309_s4, [#allocation3], %s187_s8, %s187_s8, %s188_s9  }
  0x46   :  { %125 = vst.msk [vmem:[%s308_s3] sm:$0xff] %vm21_vm0, %v121_v0  ;;  %126 = vst.msk [vmem:[%s308_s3 + $0x8] sm:$0xff] %vm21_vm0, %v122_v1 }
  0x47   :  { %127 = vst.msk [vmem:[%s308_s3 + $0x10] sm:$0xff] %vm21_vm0, %v123_v2  ;;  %128 = vst.msk [vmem:[%s308_s3 + $0x18] sm:$0xff] %vm21_vm0, %v124_v5 }
  0x48   :  { %184 = dma.done.wait [#allocation3], 64  }
  0x49   :  { %185 = vsyncadd [#allocation3], 4294967232 }
  0x4a   :  { %154 = vsyncpa [#allocation3], 1 }

</bundles_post_ra>
